<compile_context>
chip_gen: v6e
topology: v6e:2x2x1
jax: 0.10.0
libtpu: 0.0.40
codegen_flags: <defaults>
</compile_context>

<pallas_src>
import jax
import jax.numpy as jnp
from jax.experimental import pallas as pl
from jax.experimental.pallas import tpu as pltpu


# ----------------------------- model config ---------------------------------
IN_CHANNELS = 4
FEATURE_DIM = 16
EMBED_DIM = 8
DATA_DIM = 16          # only used by scale()/descale(), not by forward()
HIDDEN = 64
E1_LAYER_N = 3
BATCH = 2
CF = IN_CHANNELS * FEATURE_DIM          # 64
GATE = HIDDEN                           # padded per-gate lane width (64)
PRE_W = 256                             # fused [z | r | h | pad] width = 2 full vregs

assert CF == HIDDEN, "packing assumes the flattened input width equals HIDDEN"
assert CF <= GATE and EMBED_DIM <= GATE

# MXU operand dtype (f32 accumulation, f32 nonlinearities everywhere).
COMPUTE_DTYPE = jnp.bfloat16

_TARGET_TB = 2048   # ~1.9 MiB double-buffered VMEM at tb=2048 -> fits all generations


def _round_up(x, m):
    return (x + m - 1) // m * m


def _choose_tile(b):
    """Batch-tile rows: multiple of 16 (bf16 sublanes); >=2 tiles for larger batches
    so v7x's two TensorCores both get work on the parallel axis."""
    if b <= 256:
        return _round_up(b, 16)
    half = _round_up((b + 1) // 2, 16)
    return min(_TARGET_TB, half)


# ------------------------------- kernel -------------------------------------
def ami_kernel(x_ref, w_enc_ref, b_zrh_ref, b4_ref, w_dec_ref, b_dec_ref,
               out_ref, emb_ref):
    # x_ref:     (tb, 64)      bf16
    # w_enc_ref: (3, 64, 256)  bf16   [w1 | w2 | w3 | 0]
    # b_zrh_ref: (3, 1, 256)   f32    [b1 | b2 | b3 | 0]
    # b4_ref:    (3, 1, 64)    f32
    # w_dec_ref: (2, 64, 64)   bf16
    # b_dec_ref: (2, 1, 64)    f32
    # out_ref:   (tb, 64)      f32    decoder_prior output (flat)
    # emb_ref:   (tb, 8)       f32    encoder embedding
    h_c = x_ref[...]                         # bf16 MXU operand
    h_f = None                               # f32 cell output

    # 3 GRU-style encoder cells, one fused (64, 256) matmul each.
    for i in range(E1_LAYER_N):
        pre = (jnp.dot(h_c, w_enc_ref[i], preferred_element_type=jnp.float32)
               + b_zrh_ref[i])               # (tb, 256), exactly 2 lane tiles
        z = jax.nn.sigmoid(pre[:, 0:GATE])
        r = jax.nn.sigmoid(pre[:, GATE:2 * GATE])
        hh = jnp.tanh(pre[:, 2 * GATE:3 * GATE] + r * b4_ref[i])
        h_f = (1.0 - z) * hh                 # (dropout = identity in eval)
        h_c = h_f.astype(COMPUTE_DTYPE)

    # decoder_prior: Linear(E,64) -> tanh -> (Dropout=id) -> Linear(64, CF)
    d1 = jnp.tanh(
        jnp.dot(h_c, w_dec_ref[0], preferred_element_type=jnp.float32) + b_dec_ref[0]
    )
    out = (
        jnp.dot(d1.astype(COMPUTE_DTYPE), w_dec_ref[1],
                preferred_element_type=jnp.float32)
        + b_dec_ref[1]
    )

    out_ref[...] = out                       # (tb, 64) f32
    emb_ref[...] = h_f[:, 0:EMBED_DIM]       # (tb, 8)  f32 (real embed lanes only)


# ------------------------------ parameters -----------------------------------
def make_params(key):
    """Original (unpacked) parameterization, layout (in, out); small normal init."""
    dims = [(CF, HIDDEN), (HIDDEN, HIDDEN), (HIDDEN, EMBED_DIM)]
    keys = list(jax.random.split(key, len(dims) * 7 + 4))

    def nrm(shape):
        return 0.01 * jax.random.normal(keys.pop(0), shape, jnp.float32)

    encoder = []
    for din, dout in dims:
        w1, w2, w3 = nrm((din, dout)), nrm((din, dout)), nrm((din, dout))
        b1, b2, b3, b4 = nrm((dout,)), nrm((dout,)), nrm((dout,)), nrm((dout,))
        encoder.append((w1, b1, w2, b2, w3, b3, b4))
    dw1, db1 = nrm((EMBED_DIM, HIDDEN)), nrm((HIDDEN,))
    dw2, db2 = nrm((HIDDEN, CF)), nrm((CF,))
    return {"encoder": encoder, "decoder_prior": (dw1, db1, dw2, db2)}


def pack_params(params, compute_dtype=COMPUTE_DTYPE):
    """Pack 25 tensors into 5 lane-aligned slabs (zero padding is exact)."""
    w_enc = jnp.zeros((E1_LAYER_N, HIDDEN, PRE_W), jnp.float32)
    b_zrh = jnp.zeros((E1_LAYER_N, 1, PRE_W), jnp.float32)
    b4_s = jnp.zeros((E1_LAYER_N, 1, GATE), jnp.float32)
    for i, (w1, b1, w2, b2, w3, b3, b4) in enumerate(params["encoder"]):
        dout = w1.shape[1]
        w_enc = w_enc.at[i, :, 0:dout].set(w1)
        w_enc = w_enc.at[i, :, GATE:GATE + dout].set(w2)
        w_enc = w_enc.at[i, :, 2 * GATE:2 * GATE + dout].set(w3)
        b_zrh = b_zrh.at[i, 0, 0:dout].set(b1)
        b_zrh = b_zrh.at[i, 0, GATE:GATE + dout].set(b2)
        b_zrh = b_zrh.at[i, 0, 2 * GATE:2 * GATE + dout].set(b3)
        b4_s = b4_s.at[i, 0, 0:dout].set(b4)

    dw1, db1, dw2, db2 = params["decoder_prior"]
    w_dec = jnp.zeros((2, HIDDEN, GATE), jnp.float32)
    w_dec = w_dec.at[0, 0:EMBED_DIM, :].set(dw1)     # K padded 8 -> 64 with zeros
    w_dec = w_dec.at[1, :, 0:CF].set(dw2)
    b_dec = jnp.zeros((2, 1, GATE), jnp.float32)
    b_dec = b_dec.at[0, 0, :].set(db1)
    b_dec = b_dec.at[1, 0, 0:CF].set(db2)

    return (w_enc.astype(compute_dtype), b_zrh, b4_s,
            w_dec.astype(compute_dtype), b_dec)


# ------------------------------ wrapper --------------------------------------
@jax.jit
def ami_forward(x, w_enc, b_zrh, b4, w_dec, b_dec):
    # x: (B, 1, C, F) -> flatten to (B, C*F), matching nn.Flatten(); stream in bf16.
    b = x.shape[0]
    x2 = x.reshape(b, -1).astype(COMPUTE_DTYPE)

    tb = _choose_tile(b)
    b_pad = _round_up(b, tb)
    if b_pad != b:
        x2 = jnp.pad(x2, ((0, b_pad - b), (0, 0)))
    grid = (b_pad // tb,)

    const3 = lambda i: (0, 0, 0)  # weights stay resident across batch tiles
    out_flat, emb = pl.pallas_call(
        ami_kernel,
        grid=grid,
        in_specs=[
            pl.BlockSpec((tb, CF), lambda i: (i, 0)),
            pl.BlockSpec(w_enc.shape, const3),
            pl.BlockSpec(b_zrh.shape, const3),
            pl.BlockSpec(b4.shape, const3),
            pl.BlockSpec(w_dec.shape, const3),
            pl.BlockSpec(b_dec.shape, const3),
        ],
        out_specs=(
            pl.BlockSpec((tb, CF), lambda i: (i, 0)),
            pl.BlockSpec((tb, EMBED_DIM), lambda i: (i, 0)),
        ),
        out_shape=(
            jax.ShapeDtypeStruct((b_pad, CF), jnp.float32),
            jax.ShapeDtypeStruct((b_pad, EMBED_DIM), jnp.float32),
        ),
        compiler_params=pltpu.CompilerParams(
            dimension_semantics=("parallel",),   # v7x: split batch tiles across 2 TCs
        ),
    )(x2, w_enc, b_zrh, b4, w_dec, b_dec)

    out = out_flat[:b].reshape(-1, 1, IN_CHANNELS, FEATURE_DIM)
    embed = emb[:b]
    return out, embed


# --------------------------- pure-JAX reference ------------------------------
def ami_reference(x, params, compute_dtype=COMPUTE_DTYPE):
    """Reference with the same mixed-precision contract (bf16 operands, f32 accum)."""
    def mm(a, w):
        return jnp.dot(a.astype(compute_dtype), w.astype(compute_dtype),
                       preferred_element_type=jnp.float32)

    h = x.reshape(x.shape[0], -1).astype(jnp.float32)
    for (w1, b1, w2, b2, w3, b3, b4) in params["encoder"]:
        z = jax.nn.sigmoid(mm(h, w1) + b1)
        r = jax.nn.sigmoid(mm(h, w2) + b2)
        hh = jnp.tanh(mm(h, w3) + b3 + r * b4)
        h = (1.0 - z) * hh
    embed = h
    dw1, db1, dw2, db2 = params["decoder_prior"]
    d1 = jnp.tanh(mm(embed, dw1) + db1)
    out = mm(d1, dw2) + db2
    return out.reshape(-1, 1, IN_CHANNELS, FEATURE_DIM), embed


def _check(x, params, packed):
    out, embed = ami_forward(x, *packed)
    out = jax.block_until_ready(out)
    embed = jax.block_until_ready(embed)
    ref_out, ref_embed = ami_reference(x, params)
    assert out.shape == (x.shape[0], 1, IN_CHANNELS, FEATURE_DIM)
    assert embed.shape == (x.shape[0], EMBED_DIM)
    assert jnp.allclose(out, ref_out, atol=1e-4, rtol=1e-2), \
        float(jnp.max(jnp.abs(out - ref_out)))
    assert jnp.allclose(embed, ref_embed, atol=1e-4, rtol=1e-2), \
        float(jnp.max(jnp.abs(embed - ref_embed)))


# -------------------------------- main ---------------------------------------
if __name__ == "__main__":
    key = jax.random.PRNGKey(0)
    kx, kp, kx2 = jax.random.split(key, 3)

    params = make_params(kp)
    packed = pack_params(params)

    # small-batch path (single tile)
    x = jax.random.normal(kx, (BATCH, 1, IN_CHANNELS, FEATURE_DIM), jnp.float32)
    _check(x, params, packed)

    # larger batch exercising the multi-tile "parallel" grid + padding path
    xb = jax.random.normal(kx2, (300, 1, IN_CHANNELS, FEATURE_DIM), jnp.float32)
    _check(xb, params, packed)

    # TODO(synk): only the enc_net='GRU', direct='prior' path is implemented; the
    # non-GRU branch (EncodeLayer/DecodeLayer) and decoder_reverse are not defined /
    # not exercised by the spec's default forward. Dropout is eval-mode identity.
    print("KERNEL_OK")
</pallas_src>

<mosaic_0001>
module attributes {stable_mosaic.version = 11 : i64} {
  func.func @ami_kernel(%arg0: i32, %arg1: memref<16x64xbf16, #tpu.memory_space<vmem>>, %arg2: memref<3x64x256xbf16, #tpu.memory_space<vmem>>, %arg3: memref<3x1x256xf32, #tpu.memory_space<vmem>>, %arg4: memref<3x1x64xf32, #tpu.memory_space<vmem>>, %arg5: memref<2x64x64xbf16, #tpu.memory_space<vmem>>, %arg6: memref<2x1x64xf32, #tpu.memory_space<vmem>>, %arg7: memref<16x64xf32, #tpu.memory_space<vmem>>, %arg8: memref<16x8xf32, #tpu.memory_space<vmem>>) attributes {dimension_semantics = [#tpu.dimension_semantics<parallel>], iteration_bounds = array<i64: 1>, scalar_prefetch = 0 : i64, scratch_operands = 0 : i64, tpu.core_type = #tpu.core_type<tc>, window_params = [{transform_indices = @transform_0, window_bounds = array<i64: 16, 64>}, {pipeline_mode = #tpu.pipeline_mode<synchronous>, transform_indices = @transform_1, window_bounds = array<i64: 3, 64, 256>}, {pipeline_mode = #tpu.pipeline_mode<synchronous>, transform_indices = @transform_2, window_bounds = array<i64: 3, 1, 256>}, {pipeline_mode = #tpu.pipeline_mode<synchronous>, transform_indices = @transform_3, window_bounds = array<i64: 3, 1, 64>}, {pipeline_mode = #tpu.pipeline_mode<synchronous>, transform_indices = @transform_4, window_bounds = array<i64: 2, 64, 64>}, {pipeline_mode = #tpu.pipeline_mode<synchronous>, transform_indices = @transform_5, window_bounds = array<i64: 2, 1, 64>}, {transform_indices = @transform_6, window_bounds = array<i64: 16, 64>}, {transform_indices = @transform_7, window_bounds = array<i64: 16, 8>}]} {
    %c0 = arith.constant 0 : index
    %c0_0 = arith.constant 0 : index
    %0 = vector.load %arg1[%c0, %c0_0] : memref<16x64xbf16, #tpu.memory_space<vmem>>, vector<16x64xbf16>
    %c0_1 = arith.constant 0 : index
    %c0_2 = arith.constant 0 : index
    %c0_3 = arith.constant 0 : index
    %1 = vector.load %arg2[%c0_1, %c0_2, %c0_3] : memref<3x64x256xbf16, #tpu.memory_space<vmem>>, vector<1x64x256xbf16>
    %2 = vector.shape_cast %1 : vector<1x64x256xbf16> to vector<64x256xbf16>
    %cst = arith.constant dense<0.000000e+00> : vector<16x256xf32>
    %3 = tpu.matmul %0, %2, %cst {dimension_numbers = #tpu.dot_dimension_numbers<[1], [0], [0], [1], [0, 0, 1, 1], [], []>} : vector<16x64xbf16>, vector<64x256xbf16>, vector<16x256xf32> -> vector<16x256xf32>
    %c0_4 = arith.constant 0 : index
    %c0_5 = arith.constant 0 : index
    %c0_6 = arith.constant 0 : index
    %4 = vector.load %arg3[%c0_4, %c0_5, %c0_6] : memref<3x1x256xf32, #tpu.memory_space<vmem>>, vector<1x1x256xf32>
    %5 = vector.shape_cast %4 : vector<1x1x256xf32> to vector<1x256xf32>
    %6 = vector.broadcast %5 : vector<1x256xf32> to vector<16x256xf32>
    %7 = arith.addf %3, %6 : vector<16x256xf32>
    %8 = vector.extract_strided_slice %7 {offsets = [0, 0], sizes = [16, 64], strides = [1, 1]} : vector<16x256xf32> to vector<16x64xf32>
    %9 = arith.negf %8 : vector<16x64xf32>
    %10 = math.exp %9 : vector<16x64xf32>
    %cst_7 = arith.constant 1.000000e+00 : f32
    %11 = vector.broadcast %cst_7 : f32 to vector<16x64xf32>
    %12 = arith.addf %11, %10 : vector<16x64xf32>
    %13 = arith.divf %11, %12 : vector<16x64xf32>
    %14 = vector.extract_strided_slice %7 {offsets = [0, 64], sizes = [16, 64], strides = [1, 1]} : vector<16x256xf32> to vector<16x64xf32>
    %15 = arith.negf %14 : vector<16x64xf32>
    %16 = math.exp %15 : vector<16x64xf32>
    %cst_8 = arith.constant 1.000000e+00 : f32
    %17 = vector.broadcast %cst_8 : f32 to vector<16x64xf32>
    %18 = arith.addf %17, %16 : vector<16x64xf32>
    %19 = arith.divf %17, %18 : vector<16x64xf32>
    %20 = vector.extract_strided_slice %7 {offsets = [0, 128], sizes = [16, 64], strides = [1, 1]} : vector<16x256xf32> to vector<16x64xf32>
    %c0_9 = arith.constant 0 : index
    %c0_10 = arith.constant 0 : index
    %c0_11 = arith.constant 0 : index
    %21 = vector.load %arg4[%c0_9, %c0_10, %c0_11] : memref<3x1x64xf32, #tpu.memory_space<vmem>>, vector<1x1x64xf32>
    %22 = vector.shape_cast %21 : vector<1x1x64xf32> to vector<1x64xf32>
    %23 = vector.broadcast %22 : vector<1x64xf32> to vector<16x64xf32>
    %24 = arith.mulf %19, %23 : vector<16x64xf32>
    %25 = arith.addf %20, %24 : vector<16x64xf32>
    %26 = math.tanh %25 : vector<16x64xf32>
    %cst_12 = arith.constant 1.000000e+00 : f32
    %27 = vector.broadcast %cst_12 : f32 to vector<16x64xf32>
    %28 = arith.subf %27, %13 : vector<16x64xf32>
    %29 = arith.mulf %28, %26 : vector<16x64xf32>
    %30 = arith.truncf %29 : vector<16x64xf32> to vector<16x64xbf16>
    %c1 = arith.constant 1 : index
    %c0_13 = arith.constant 0 : index
    %c0_14 = arith.constant 0 : index
    %31 = vector.load %arg2[%c1, %c0_13, %c0_14] : memref<3x64x256xbf16, #tpu.memory_space<vmem>>, vector<1x64x256xbf16>
    %32 = vector.shape_cast %31 : vector<1x64x256xbf16> to vector<64x256xbf16>
    %cst_15 = arith.constant dense<0.000000e+00> : vector<16x256xf32>
    %33 = tpu.matmul %30, %32, %cst_15 {dimension_numbers = #tpu.dot_dimension_numbers<[1], [0], [0], [1], [0, 0, 1, 1], [], []>} : vector<16x64xbf16>, vector<64x256xbf16>, vector<16x256xf32> -> vector<16x256xf32>
    %c1_16 = arith.constant 1 : index
    %c0_17 = arith.constant 0 : index
    %c0_18 = arith.constant 0 : index
    %34 = vector.load %arg3[%c1_16, %c0_17, %c0_18] : memref<3x1x256xf32, #tpu.memory_space<vmem>>, vector<1x1x256xf32>
    %35 = vector.shape_cast %34 : vector<1x1x256xf32> to vector<1x256xf32>
    %36 = vector.broadcast %35 : vector<1x256xf32> to vector<16x256xf32>
    %37 = arith.addf %33, %36 : vector<16x256xf32>
    %38 = vector.extract_strided_slice %37 {offsets = [0, 0], sizes = [16, 64], strides = [1, 1]} : vector<16x256xf32> to vector<16x64xf32>
    %39 = arith.negf %38 : vector<16x64xf32>
    %40 = math.exp %39 : vector<16x64xf32>
    %cst_19 = arith.constant 1.000000e+00 : f32
    %41 = vector.broadcast %cst_19 : f32 to vector<16x64xf32>
    %42 = arith.addf %41, %40 : vector<16x64xf32>
    %43 = arith.divf %41, %42 : vector<16x64xf32>
    %44 = vector.extract_strided_slice %37 {offsets = [0, 64], sizes = [16, 64], strides = [1, 1]} : vector<16x256xf32> to vector<16x64xf32>
    %45 = arith.negf %44 : vector<16x64xf32>
    %46 = math.exp %45 : vector<16x64xf32>
    %cst_20 = arith.constant 1.000000e+00 : f32
    %47 = vector.broadcast %cst_20 : f32 to vector<16x64xf32>
    %48 = arith.addf %47, %46 : vector<16x64xf32>
    %49 = arith.divf %47, %48 : vector<16x64xf32>
    %50 = vector.extract_strided_slice %37 {offsets = [0, 128], sizes = [16, 64], strides = [1, 1]} : vector<16x256xf32> to vector<16x64xf32>
    %c1_21 = arith.constant 1 : index
    %c0_22 = arith.constant 0 : index
    %c0_23 = arith.constant 0 : index
    %51 = vector.load %arg4[%c1_21, %c0_22, %c0_23] : memref<3x1x64xf32, #tpu.memory_space<vmem>>, vector<1x1x64xf32>
    %52 = vector.shape_cast %51 : vector<1x1x64xf32> to vector<1x64xf32>
    %53 = vector.broadcast %52 : vector<1x64xf32> to vector<16x64xf32>
    %54 = arith.mulf %49, %53 : vector<16x64xf32>
    %55 = arith.addf %50, %54 : vector<16x64xf32>
    %56 = math.tanh %55 : vector<16x64xf32>
    %cst_24 = arith.constant 1.000000e+00 : f32
    %57 = vector.broadcast %cst_24 : f32 to vector<16x64xf32>
    %58 = arith.subf %57, %43 : vector<16x64xf32>
    %59 = arith.mulf %58, %56 : vector<16x64xf32>
    %60 = arith.truncf %59 : vector<16x64xf32> to vector<16x64xbf16>
    %c2 = arith.constant 2 : index
    %c0_25 = arith.constant 0 : index
    %c0_26 = arith.constant 0 : index
    %61 = vector.load %arg2[%c2, %c0_25, %c0_26] : memref<3x64x256xbf16, #tpu.memory_space<vmem>>, vector<1x64x256xbf16>
    %62 = vector.shape_cast %61 : vector<1x64x256xbf16> to vector<64x256xbf16>
    %cst_27 = arith.constant dense<0.000000e+00> : vector<16x256xf32>
    %63 = tpu.matmul %60, %62, %cst_27 {dimension_numbers = #tpu.dot_dimension_numbers<[1], [0], [0], [1], [0, 0, 1, 1], [], []>} : vector<16x64xbf16>, vector<64x256xbf16>, vector<16x256xf32> -> vector<16x256xf32>
    %c2_28 = arith.constant 2 : index
    %c0_29 = arith.constant 0 : index
    %c0_30 = arith.constant 0 : index
    %64 = vector.load %arg3[%c2_28, %c0_29, %c0_30] : memref<3x1x256xf32, #tpu.memory_space<vmem>>, vector<1x1x256xf32>
    %65 = vector.shape_cast %64 : vector<1x1x256xf32> to vector<1x256xf32>
    %66 = vector.broadcast %65 : vector<1x256xf32> to vector<16x256xf32>
    %67 = arith.addf %63, %66 : vector<16x256xf32>
    %68 = vector.extract_strided_slice %67 {offsets = [0, 0], sizes = [16, 64], strides = [1, 1]} : vector<16x256xf32> to vector<16x64xf32>
    %69 = arith.negf %68 : vector<16x64xf32>
    %70 = math.exp %69 : vector<16x64xf32>
    %cst_31 = arith.constant 1.000000e+00 : f32
    %71 = vector.broadcast %cst_31 : f32 to vector<16x64xf32>
    %72 = arith.addf %71, %70 : vector<16x64xf32>
    %73 = arith.divf %71, %72 : vector<16x64xf32>
    %74 = vector.extract_strided_slice %67 {offsets = [0, 64], sizes = [16, 64], strides = [1, 1]} : vector<16x256xf32> to vector<16x64xf32>
    %75 = arith.negf %74 : vector<16x64xf32>
    %76 = math.exp %75 : vector<16x64xf32>
    %cst_32 = arith.constant 1.000000e+00 : f32
    %77 = vector.broadcast %cst_32 : f32 to vector<16x64xf32>
    %78 = arith.addf %77, %76 : vector<16x64xf32>
    %79 = arith.divf %77, %78 : vector<16x64xf32>
    %80 = vector.extract_strided_slice %67 {offsets = [0, 128], sizes = [16, 64], strides = [1, 1]} : vector<16x256xf32> to vector<16x64xf32>
    %c2_33 = arith.constant 2 : index
    %c0_34 = arith.constant 0 : index
    %c0_35 = arith.constant 0 : index
    %81 = vector.load %arg4[%c2_33, %c0_34, %c0_35] : memref<3x1x64xf32, #tpu.memory_space<vmem>>, vector<1x1x64xf32>
    %82 = vector.shape_cast %81 : vector<1x1x64xf32> to vector<1x64xf32>
    %83 = vector.broadcast %82 : vector<1x64xf32> to vector<16x64xf32>
    %84 = arith.mulf %79, %83 : vector<16x64xf32>
    %85 = arith.addf %80, %84 : vector<16x64xf32>
    %86 = math.tanh %85 : vector<16x64xf32>
    %cst_36 = arith.constant 1.000000e+00 : f32
    %87 = vector.broadcast %cst_36 : f32 to vector<16x64xf32>
    %88 = arith.subf %87, %73 : vector<16x64xf32>
    %89 = arith.mulf %88, %86 : vector<16x64xf32>
    %90 = arith.truncf %89 : vector<16x64xf32> to vector<16x64xbf16>
    %c0_37 = arith.constant 0 : index
    %c0_38 = arith.constant 0 : index
    %c0_39 = arith.constant 0 : index
    %91 = vector.load %arg5[%c0_37, %c0_38, %c0_39] : memref<2x64x64xbf16, #tpu.memory_space<vmem>>, vector<1x64x64xbf16>
    %92 = vector.shape_cast %91 : vector<1x64x64xbf16> to vector<64x64xbf16>
    %cst_40 = arith.constant dense<0.000000e+00> : vector<16x64xf32>
    %93 = tpu.matmul %90, %92, %cst_40 {dimension_numbers = #tpu.dot_dimension_numbers<[1], [0], [0], [1], [0, 0, 1, 1], [], []>} : vector<16x64xbf16>, vector<64x64xbf16>, vector<16x64xf32> -> vector<16x64xf32>
    %c0_41 = arith.constant 0 : index
    %c0_42 = arith.constant 0 : index
    %c0_43 = arith.constant 0 : index
    %94 = vector.load %arg6[%c0_41, %c0_42, %c0_43] : memref<2x1x64xf32, #tpu.memory_space<vmem>>, vector<1x1x64xf32>
    %95 = vector.shape_cast %94 : vector<1x1x64xf32> to vector<1x64xf32>
    %96 = vector.broadcast %95 : vector<1x64xf32> to vector<16x64xf32>
    %97 = arith.addf %93, %96 : vector<16x64xf32>
    %98 = math.tanh %97 : vector<16x64xf32>
    %99 = arith.truncf %98 : vector<16x64xf32> to vector<16x64xbf16>
    %c1_44 = arith.constant 1 : index
    %c0_45 = arith.constant 0 : index
    %c0_46 = arith.constant 0 : index
    %100 = vector.load %arg5[%c1_44, %c0_45, %c0_46] : memref<2x64x64xbf16, #tpu.memory_space<vmem>>, vector<1x64x64xbf16>
    %101 = vector.shape_cast %100 : vector<1x64x64xbf16> to vector<64x64xbf16>
    %cst_47 = arith.constant dense<0.000000e+00> : vector<16x64xf32>
    %102 = tpu.matmul %99, %101, %cst_47 {dimension_numbers = #tpu.dot_dimension_numbers<[1], [0], [0], [1], [0, 0, 1, 1], [], []>} : vector<16x64xbf16>, vector<64x64xbf16>, vector<16x64xf32> -> vector<16x64xf32>
    %c1_48 = arith.constant 1 : index
    %c0_49 = arith.constant 0 : index
    %c0_50 = arith.constant 0 : index
    %103 = vector.load %arg6[%c1_48, %c0_49, %c0_50] : memref<2x1x64xf32, #tpu.memory_space<vmem>>, vector<1x1x64xf32>
    %104 = vector.shape_cast %103 : vector<1x1x64xf32> to vector<1x64xf32>
    %105 = vector.broadcast %104 : vector<1x64xf32> to vector<16x64xf32>
    %106 = arith.addf %102, %105 : vector<16x64xf32>
    %c0_51 = arith.constant 0 : index
    %c0_52 = arith.constant 0 : index
    %107 = vector.load %arg7[%c0_51, %c0_52] : memref<16x64xf32, #tpu.memory_space<vmem>>, vector<16x64xf32>
    tpu.vector_store %arg7[%c0_51, %c0_52], %106 {strides = array<i32>} : memref<16x64xf32, #tpu.memory_space<vmem>>, vector<16x64xf32>,
    %108 = vector.extract_strided_slice %89 {offsets = [0, 0], sizes = [16, 8], strides = [1, 1]} : vector<16x64xf32> to vector<16x8xf32>
    %c0_53 = arith.constant 0 : index
    %c0_54 = arith.constant 0 : index
    %109 = vector.load %arg8[%c0_53, %c0_54] : memref<16x8xf32, #tpu.memory_space<vmem>>, vector<16x8xf32>
    tpu.vector_store %arg8[%c0_53, %c0_54], %108 {strides = array<i32>} : memref<16x8xf32, #tpu.memory_space<vmem>>, vector<16x8xf32>,
    return
  }
  func.func @transform_0(%arg0: i32) -> (i32, i32) {
    %c0_i32 = arith.constant 0 : i32
    %c0_i32_0 = arith.constant 0 : i32
    return %arg0, %c0_i32 : i32, i32
  }
  func.func @transform_1(%arg0: i32) -> (i32, i32, i32) {
    %c0_i32 = arith.constant 0 : i32
    %c0_i32_0 = arith.constant 0 : i32
    %c0_i32_1 = arith.constant 0 : i32
    %c0_i32_2 = arith.constant 0 : i32
    return %c0_i32, %c0_i32_0, %c0_i32_1 : i32, i32, i32
  }
  func.func @transform_2(%arg0: i32) -> (i32, i32, i32) {
    %c0_i32 = arith.constant 0 : i32
    %c0_i32_0 = arith.constant 0 : i32
    %c0_i32_1 = arith.constant 0 : i32
    %c0_i32_2 = arith.constant 0 : i32
    return %c0_i32, %c0_i32_0, %c0_i32_1 : i32, i32, i32
  }
  func.func @transform_3(%arg0: i32) -> (i32, i32, i32) {
    %c0_i32 = arith.constant 0 : i32
    %c0_i32_0 = arith.constant 0 : i32
    %c0_i32_1 = arith.constant 0 : i32
    %c0_i32_2 = arith.constant 0 : i32
    return %c0_i32, %c0_i32_0, %c0_i32_1 : i32, i32, i32
  }
  func.func @transform_4(%arg0: i32) -> (i32, i32, i32) {
    %c0_i32 = arith.constant 0 : i32
    %c0_i32_0 = arith.constant 0 : i32
    %c0_i32_1 = arith.constant 0 : i32
    %c0_i32_2 = arith.constant 0 : i32
    return %c0_i32, %c0_i32_0, %c0_i32_1 : i32, i32, i32
  }
  func.func @transform_5(%arg0: i32) -> (i32, i32, i32) {
    %c0_i32 = arith.constant 0 : i32
    %c0_i32_0 = arith.constant 0 : i32
    %c0_i32_1 = arith.constant 0 : i32
    %c0_i32_2 = arith.constant 0 : i32
    return %c0_i32, %c0_i32_0, %c0_i32_1 : i32, i32, i32
  }
  func.func @transform_6(%arg0: i32) -> (i32, i32) {
    %c0_i32 = arith.constant 0 : i32
    %c0_i32_0 = arith.constant 0 : i32
    return %arg0, %c0_i32 : i32, i32
  }
  func.func @transform_7(%arg0: i32) -> (i32, i32) {
    %c0_i32 = arith.constant 0 : i32
    %c0_i32_0 = arith.constant 0 : i32
    return %arg0, %c0_i32 : i32, i32
  }
}

</mosaic_0001>

<bundles_post_ra>
// kernel: ami_forward.1
= control target key start
LH: loop header
LB: loop body
LE: loop exit
PB: predicated region body
PF: predicated region fallthrough
CT: control target
= control target key end

     0   :  { %13 = vsyncpa [#allocation3], 0  ;;  %s1040_s0 = inlined_call_operand.vmem [shape: bf16[16,64], index: 0, kind: input, shape index: {}]   ;;  %s1041_s1 = inlined_call_operand.hbm [shape: bf16[3,64,256], index: 1, kind: input, shape index: {}]   ;;  %s1042_s2 = inlined_call_operand.vmem [shape: f32[3,1,256], index: 2, kind: input, shape index: {}]   ;;  %s1043_s3 = inlined_call_operand.vmem [shape: f32[3,1,64], index: 3, kind: input, shape index: {}]   ;;  %s1044_s4 = inlined_call_operand.hbm [shape: bf16[2,64,64], index: 4, kind: input, shape index: {}]   ;;  %s1045_s5 = inlined_call_operand.vmem [shape: f32[2,1,64], index: 5, kind: input, shape index: {}]   ;;  %s1046_s6 = inlined_call_operand.vmem [shape: f32[16,64], index: 6, kind: output, shape index: {0}]   ;;  %s1047_s7 = inlined_call_operand.vmem [shape: f32[16,8], index: 7, kind: output, shape index: {1}]  }
   0x1   :  { %14 = vsyncpa [#allocation5], 0  ;;  %s918_s24 = smov [#allocation2]  }
   0x2   :  { %s22_s25 = sshll.u32 %s918_s24, 4  ;;  %s23_s25 = int_to_ptr.vmem [resolvable:$true] %s22_s25 }
   0x3   :  { %s882_s26 = scalar_lea.vmem %s23_s25, 3072  ;;  %p887_p1 = scmp.lt.s32.totalorder %s23_s25, %s23_s25 }
   0x4   :  { %p883_p0 = scmp.ne.s32.totalorder %s23_s25, %s882_s26  ;;  %p888_p2 = scmp.lt.s32.totalorder %s882_s26, %s882_s26 }
   0x6   :  { %p889_p3 = por %p888_p2, %p887_p1 }
   0x8   :  { %p890_p4 = pnand %p889_p3, %p883_p0 }
   0xa   :  { %893 = shalt.err (!%p890_p4)
}
   0xb   :  { %s919_s27 = smov 128   ;;  %s920_s28 = smov 8  }
   0xc   :  { %28 = dma.hbm_to_vmem [thread:$0]  %s1041_s1, 3072, %s23_s25, [#allocation3], %s919_s27, %s919_s27, %s920_s28  }
   0xd   :  { %s921_s8 = smov [#allocation4]  }
   0xe   :  { %s38_s9 = sshll.u32 %s921_s8, 4  ;;  %s39_s9 = int_to_ptr.vmem [resolvable:$true] %s38_s9 }
   0xf   :  { %s902_s10 = scalar_lea.vmem %s39_s9, 1024  ;;  %p907_p6 = scmp.lt.s32.totalorder %s39_s9, %s39_s9 }
  0x10   :  { %p903_p5 = scmp.ne.s32.totalorder %s39_s9, %s902_s10  ;;  %p908_p7 = scmp.lt.s32.totalorder %s902_s10, %s902_s10 }
  0x12   :  { %p909_p8 = por %p908_p7, %p907_p6 }
  0x14   :  { %p910_p9 = pnand %p909_p8, %p903_p5 }
  0x16   :  { %913 = shalt.err (!%p910_p9)
}
  0x17   :  { %s922_s11 = smov 64   ;;  %s923_s12 = smov 4  }
  0x18   :  { %44 = dma.hbm_to_vmem [thread:$0]  %s1044_s4, 1024, %s39_s9, [#allocation5], %s922_s11, %s922_s11, %s923_s12  }
  0x19   :  { %914 = dma.done.wait [#allocation3], 3072  }
  0x1a   :  { %915 = vsyncadd [#allocation3], 4294964224 }
  0x1b   :  { %916 = dma.done.wait [#allocation5], 1024  }
  0x1c   :  { %917 = vsyncadd [#allocation5], 4294966272  ;;  %v924_v0 = vmov 0   ;;  %v789_v1 = vld [vmem:[#allocation2 + $0x34] ss:$8 sps:$4 sm:$0xff]   ;;  %v801_v10 = vld [vmem:[%s1040_s0] sm:$0xff]   ;;  %v66_v11 = vlaneseq }
  0x1d   :  { %157 = vmatprep.mubr.bf16.mxu0 %v924_v0  ;;  %305 = vmatprep.mubr.bf16.mxu1 %v924_v0  ;;  %v791_v2 = vld [vmem:[#allocation2 + $0x30] ss:$8 sps:$4 sm:$0xff]   ;;  %v792_v3 = vld [vmem:[#allocation2 + $0x24] ss:$8 sps:$4 sm:$0xff]   ;;  %v794_v4 = vld [vmem:[#allocation2 + $0x20] ss:$8 sps:$4 sm:$0xff]  }
  0x1e   :  { %133 = vmatprep.subr.bf16.mxu0 %v789_v1  ;;  %v795_v5 = vld [vmem:[#allocation2 + $0x14] ss:$8 sps:$4 sm:$0xff]   ;;  %v797_v6 = vld [vmem:[#allocation2 + $0x10] ss:$8 sps:$4 sm:$0xff]   ;;  %v798_v7 = vld [vmem:[#allocation2 + $0x4] ss:$8 sps:$4 sm:$0xff]  }
  0x1f   :  { %134 = vmatpush1.bf16.msra.mxu0 %v791_v2  ;;  %v704_v8 = vld [vmem:[%s1043_s3] ss:$0 sm:$0xff]  ;;  %vm121_vm0 = vcmask 523264   ;;  %v67_v12 = vshrl.u32 %v66_v11, 7  ;;  %v802_v27 = vld [vmem:[#allocation2 + $0x74] ss:$8 sps:$4 sm:$0xff]  }
  0x20   :  { %135 = vmatprep.subr.bf16.mxu0 %v792_v3  ;;  %186 = vrot.lane.b32.xlu0 %v704_v8, %s922_s11  ;;  %v800_v9 = vld [vmem:[#allocation2] ss:$8 sps:$4 sm:$0xff]   ;;  %v804_v28 = vld [vmem:[#allocation2 + $0x70] ss:$8 sps:$4 sm:$0xff]   ;;  %v805_v29 = vld [vmem:[#allocation2 + $0x64] ss:$8 sps:$4 sm:$0xff]  }
  0x21   :  { %v983_v13 = vsub.s32 0, %v67_v12  ;;  %v64_v14 = vld [vmem:[%s1042_s2] sm:$0x3]  ;;  %281 = vmatprep.subr.bf16.mxu1 %v802_v27  ;;  %v808_v33 = vld [vmem:[#allocation2 + $0x54] ss:$8 sps:$4 sm:$0xff]   ;;  %v995_v41 = vsub.s32 1, %v67_v12 }
  0x22   :  { %282 = vmatpush1.bf16.msra.mxu1 %v804_v28  ;;  %v807_v31 = vld [vmem:[#allocation2 + $0x60] ss:$8 sps:$4 sm:$0xff]   ;;  %v810_v35 = vld [vmem:[#allocation2 + $0x50] ss:$8 sps:$4 sm:$0xff]   ;;  %v811_v37 = vld [vmem:[#allocation2 + $0x44] ss:$8 sps:$4 sm:$0xff]  }
  0x23   :  { %136 = vmatpush1.bf16.msra.mxu0 %v794_v4  ;;  %v69_v15 = vrot.slane %v64_v14, %v983_v13  ;;  %283 = vmatprep.subr.bf16.mxu1 %v805_v29  ;;  %v813_v39 = vld [vmem:[#allocation2 + $0x40] ss:$8 sps:$4 sm:$0xff]   ;;  %v73_v42 = vrot.slane %v64_v14, %v995_v41  ;;  %v819_v8 = vld [vmem:[#allocation2 + $0xa4] ss:$8 sps:$4 sm:$0xff]   ;;  %v822_v12 = vld [vmem:[#allocation2 + $0x94] ss:$8 sps:$4 sm:$0xff]  }
  0x24   :  { %137 = vmatprep.subr.bf16.mxu0 %v795_v5  ;;  %v718_v40 = vld [vmem:[%s1043_s3 + $0x1] ss:$0 sm:$0xff]  ;;  %v705_v57 = vld [vmem:[%s1042_s2 + $0x2] sm:$0x3]  ;;  %vm926_vm1 = vmmov 0   ;;  %vm679_vm2 = vcmask 64512  }
  0x25   :  { %v223_v58 = vrot.slane %v705_v57, %v983_v13 }
  0x26   :  { %284 = vmatpush1.bf16.msra.mxu1 %v807_v31 }
  0x27   :  { %138 = vmatpush1.bf16.msra.mxu0 %v797_v6  ;;  %285 = vmatprep.subr.bf16.mxu1 %v808_v33  ;;  %v814_v6 = vld [vmem:[#allocation2 + $0xb0] ss:$8 sps:$4 sm:$0xff]  }
  0x28   :  { %139 = vmatprep.subr.bf16.mxu0 %v798_v7  ;;  %v816_v7 = vld [vmem:[#allocation2 + $0xb4] ss:$8 sps:$4 sm:$0xff]  }
  0x2a   :  { %286 = vmatpush1.bf16.msra.mxu1 %v810_v35 }
  0x2b   :  { %140 = vmatpush1.bf16.msra.mxu0 %v800_v9  ;;  %287 = vmatprep.subr.bf16.mxu1 %v811_v37 }
  0x2c   :  { %430 = vmatprep.subr.bf16.mxu0 %v816_v7 }
  0x2e   :  { %701 = vmatmul.mubr.msk.bf16.vlgmr.msra.gmra.mxu0 %vm121_vm0, %v801_v10  ;;  %288 = vmatpush1.bf16.msra.mxu1 %v813_v39  ;;  %v817_v10 = vld [vmem:[#allocation2 + $0xa0] ss:$8 sps:$4 sm:$0xff]  }
  0x2f   :  { %454 = vmatprep.mubr.bf16.mxu0 %v924_v0  ;;  %431 = vmatpush1.bf16.msra.mxu0 %v814_v6 }
  0x30   :  { %432 = vmatprep.subr.bf16.mxu0 %v819_v8 }
  0x33   :  { %433 = vmatpush1.bf16.msra.mxu0 %v817_v10  ;;  %v831_v10 = vld [vmem:[#allocation4 + $0x30] sm:$0xff]  }
  0x34   :  { %434 = vmatprep.subr.bf16.mxu0 %v822_v12  ;;  %v833_v12 = vld [vmem:[#allocation4 + $0x20] sm:$0xff]  }
  0x92   :  { %v187_v30 = vpop.permute.xlu0 %186 }
  0xee   :  { %v159_v16 = vpop.f32.mrf.mxu0 }
  0xef   :  { %v160_v17 = vadd.f32 %v159_v16, %v69_v15 }
  0xf0   :  { %v161_v18 = vpop.f32.mrf.mxu0 }
  0xf1   :  { %v702_v19 = vmul.f32 -1.442695, %v160_v17  ;;  %v162_v43 = vadd.f32 %v161_v18, %v73_v42  ;;  %v825_v17 = vld [vmem:[#allocation2 + $0x84] ss:$8 sps:$4 sm:$0xff]  }
  0xf2   :  { %v163_v20 = vpop.f32.mrf.mxu0 }
  0xf3   :  { %834 = vpow2.f32 %v702_v19  ;;  %v164_v21 = vadd.f32 %v163_v20, %v69_v15  ;;  %v820_v15 = vld [vmem:[#allocation2 + $0x90] ss:$8 sps:$4 sm:$0xff]   ;;  %v823_v19 = vld [vmem:[#allocation2 + $0x80] ss:$8 sps:$4 sm:$0xff]  }
  0xf4   :  { %v165_v44 = vpop.f32.mrf.mxu0  ;;  %435 = vmatpush1.bf16.msra.mxu0 %v820_v15  ;;  %v732_v20 = vld [vmem:[%s1043_s3 + $0x2] ss:$0 sm:$0xff] }
  0xf5   :  { %v703_v22 = vmul.f32 -1.442695, %v164_v21  ;;  %v166_v47 = vadd.f32 %v165_v44, %v73_v42  ;;  %436 = vmatprep.subr.bf16.mxu0 %v825_v17  ;;  %v227_v21 = vrot.slane %v705_v57, %v995_v41 }
  0xf7   :  { %836 = vpow2.f32 %v703_v22 }
  0xf8   :  { %437 = vmatpush1.bf16.msra.mxu0 %v823_v19 }
 0x100   :  { %v835_v23 = vpop.eup %834 }
 0x101   :  { %v174_v24 = vadd.f32 1.0, %v835_v23 }
 0x103   :  { %838 = vrcp.f32 %v174_v24 }
 0x104   :  { %v837_v25 = vpop.eup %836 }
 0x105   :  { %v175_v26 = vadd.f32 1.0, %v837_v25 }
 0x107   :  { %840 = vrcp.f32 %v175_v26 }
 0x110   :  { %v839_v32 = vpop.eup %838 }
 0x111   :  { %v189_v34 = vmul.f32 %v839_v32, %v187_v30  ;;  %v203_v50 = vsub.f32 1.0, %v839_v32 }
 0x113   :  { %193 = vrot.lane.b32.xlu0 %v189_v34, %s922_s11 }
 0x114   :  { %v841_v36 = vpop.eup %840 }
 0x115   :  { %v190_v38 = vmul.f32 %v841_v36, %v187_v30  ;;  %v204_v53 = vsub.f32 1.0, %v841_v36  ;;  %v719_v36 = vld [vmem:[%s1042_s2 + $0x4] sm:$0x3] }
 0x116   :  { %v372_v37 = vrot.slane %v719_v36, %v983_v13 }
 0x117   :  { %195 = vrot.lane.b32.xlu1 %v190_v38, %s922_s11 }
 0x11b   :  { %335 = vrot.lane.b32.xlu1 %v718_v40, %s922_s11 }
 0x185   :  { %v194_v45 = vpop.permute.xlu0 %193 }
 0x186   :  { %v199_v46 = vadd.f32 %v194_v45, %v162_v43 }
 0x188   :  { %842 = vtanh.f32 %v199_v46 }
 0x189   :  { %v196_v48 = vpop.permute.xlu1 %195 }
 0x18a   :  { %v200_v49 = vadd.f32 %v196_v48, %v166_v47 }
 0x18c   :  { %844 = vtanh.f32 %v200_v49 }
 0x18d   :  { %v336_v9 = vpop.permute.xlu1 %335 }
 0x195   :  { %v843_v51 = vpop.eup %842 }
 0x196   :  { %v205_v52 = vmul.f32 %v843_v51, %v203_v50  ;;  %v826_v50 = vld [vmem:[#allocation4 + $0x18] sm:$0xff]   ;;  %v925_v51 = vmov 0.0  }
 0x197   :  { %756 = vmatprep.subr.bf16.mxu1 %v925_v51  ;;  %768 = vmatprep.subr.bf16.mxu0 %v925_v51 }
 0x199   :  { %v845_v54 = vpop.eup %844 }
 0x19a   :  { %v206_v55 = vmul.f32 %v845_v54, %v204_v53 }
 0x19c   :  { %v207_v56 = vpack.c.bf16 %v206_v55, %v205_v52  ;;  %v827_v52 = vld [vmem:[#allocation4 + $0x10] sm:$0xff]   ;;  %v828_v55 = vld [vmem:[#allocation4 + $0x8] sm:$0xff]  }
 0x19e   :  { %714 = vmatmul.mubr.msk.bf16.vlgmr.msra.gmra.mxu1 %vm121_vm0, %v207_v56 }
 0x19f   :  { %764 = vmatprep.mubr.msk.bf16.mxu1 %vm926_vm1, %v925_v51  ;;  %757 = vmatpush3.bf16.msra.mxu1 %v826_v50 }
 0x1a0   :  { %758 = vmatprep.subr.bf16.mxu1 %v925_v51 }
 0x1a3   :  { %759 = vmatpush3.bf16.msra.mxu1 %v827_v52 }
 0x1a4   :  { %760 = vmatprep.subr.bf16.mxu1 %v925_v51 }
 0x1a7   :  { %761 = vmatpush3.bf16.msra.mxu1 %v828_v55 }
 0x1a8   :  { %762 = vmatprep.subr.bf16.mxu1 %v925_v51 }
 0x25e   :  { %v307_v59 = vpop.f32.mrf.mxu1 }
 0x25f   :  { %v308_v60 = vadd.f32 %v307_v59, %v223_v58  ;;  %v376_v59 = vrot.slane %v719_v36, %v995_v41 }
 0x260   :  { %v309_v61 = vpop.f32.mrf.mxu1 }
 0x261   :  { %v715_v62 = vmul.f32 -1.442695, %v308_v60  ;;  %v310_v22 = vadd.f32 %v309_v61, %v227_v21 }
 0x262   :  { %v311_v63 = vpop.f32.mrf.mxu1 }
 0x263   :  { %846 = vpow2.f32 %v715_v62  ;;  %v312_v0 = vadd.f32 %v311_v63, %v223_v58  ;;  %v829_v58 = vld [vmem:[#allocation4] sm:$0xff]  }
 0x264   :  { %v313_v23 = vpop.f32.mrf.mxu1  ;;  %763 = vmatpush3.bf16.msra.mxu1 %v829_v58 }
 0x265   :  { %v716_v1 = vmul.f32 -1.442695, %v312_v0  ;;  %v314_v26 = vadd.f32 %v313_v23, %v227_v21 }
 0x267   :  { %848 = vpow2.f32 %v716_v1 }
 0x270   :  { %v847_v2 = vpop.eup %846 }
 0x271   :  { %v322_v3 = vadd.f32 1.0, %v847_v2 }
 0x273   :  { %850 = vrcp.f32 %v322_v3 }
 0x274   :  { %v849_v4 = vpop.eup %848 }
 0x275   :  { %v323_v5 = vadd.f32 1.0, %v849_v4 }
 0x277   :  { %852 = vrcp.f32 %v323_v5 }
 0x280   :  { %v851_v11 = vpop.eup %850 }
 0x281   :  { %v338_v14 = vmul.f32 %v851_v11, %v336_v9  ;;  %v352_v29 = vsub.f32 1.0, %v851_v11  ;;  %v832_v11 = vld [vmem:[#allocation4 + $0x28] sm:$0xff]  }
 0x283   :  { %342 = vrot.lane.b32.xlu0 %v338_v14, %s922_s11  ;;  %v733_v14 = vld [vmem:[%s1045_s5] ss:$0 sm:$0xff] }
 0x284   :  { %v853_v16 = vpop.eup %852 }
 0x285   :  { %v339_v18 = vmul.f32 %v853_v16, %v336_v9  ;;  %v353_v32 = vsub.f32 1.0, %v853_v16  ;;  %v830_v9 = vld [vmem:[#allocation4 + $0x38] sm:$0xff]  }
 0x287   :  { %344 = vrot.lane.b32.xlu1 %v339_v18, %s922_s11  ;;  %484 = vrot.lane.b32.xlu0 %v732_v20, %s922_s11 }
 0x2f5   :  { %v343_v24 = vpop.permute.xlu0 %342 }
 0x2f6   :  { %v348_v25 = vadd.f32 %v343_v24, %v310_v22  ;;  %v740_v24 = vld [vmem:[%s1045_s5 + $0x1] ss:$0 sm:$0xff] }
 0x2f8   :  { %854 = vtanh.f32 %v348_v25 }
 0x2f9   :  { %v345_v27 = vpop.permute.xlu1 %344  ;;  %v485_v13 = vpop.permute.xlu0 %484 }
 0x2fa   :  { %v349_v28 = vadd.f32 %v345_v27, %v314_v26 }
 0x2fc   :  { %856 = vtanh.f32 %v349_v28 }
 0x305   :  { %v855_v30 = vpop.eup %854 }
 0x306   :  { %v354_v31 = vmul.f32 %v855_v30, %v352_v29 }
 0x309   :  { %v857_v33 = vpop.eup %856 }
 0x30a   :  { %v355_v34 = vmul.f32 %v857_v33, %v353_v32 }
 0x30c   :  { %v356_v35 = vpack.c.bf16 %v355_v34, %v354_v31 }
 0x30e   :  { %728 = vmatmul.mubr.msk.bf16.vlgmr.msra.gmra.mxu0 %vm121_vm0, %v356_v35 }
 0x30f   :  { %776 = vmatprep.mubr.msk.bf16.mxu0 %vm926_vm1, %v925_v51  ;;  %769 = vmatpush3.bf16.msra.mxu0 %v830_v9 }
 0x310   :  { %770 = vmatprep.subr.bf16.mxu0 %v925_v51 }
 0x313   :  { %771 = vmatpush3.bf16.msra.mxu0 %v831_v10 }
 0x314   :  { %772 = vmatprep.subr.bf16.mxu0 %v925_v51 }
 0x317   :  { %773 = vmatpush3.bf16.msra.mxu0 %v832_v11 }
 0x318   :  { %774 = vmatprep.subr.bf16.mxu0 %v925_v51 }
 0x31b   :  { %775 = vmatpush3.bf16.msra.mxu0 %v833_v12 }
 0x3ce   :  { %v456_v38 = vpop.f32.mrf.mxu0 }
 0x3cf   :  { %v457_v39 = vadd.f32 %v456_v38, %v372_v37 }
 0x3d0   :  { %v458_v40 = vpop.f32.mrf.mxu0 }
 0x3d1   :  { %v729_v42 = vmul.f32 -1.442695, %v457_v39  ;;  %v459_v60 = vadd.f32 %v458_v40, %v376_v59 }
 0x3d2   :  { %v460_v43 = vpop.f32.mrf.mxu0 }
 0x3d3   :  { %858 = vpow2.f32 %v729_v42  ;;  %v461_v44 = vadd.f32 %v460_v43, %v372_v37 }
 0x3d4   :  { %v462_v61 = vpop.f32.mrf.mxu0 }
 0x3d5   :  { %v730_v45 = vmul.f32 -1.442695, %v461_v44  ;;  %v463_v0 = vadd.f32 %v462_v61, %v376_v59 }
 0x3d7   :  { %860 = vpow2.f32 %v730_v45 }
 0x3e0   :  { %v859_v46 = vpop.eup %858 }
 0x3e1   :  { %v471_v47 = vadd.f32 1.0, %v859_v46 }
 0x3e3   :  { %862 = vrcp.f32 %v471_v47 }
 0x3e4   :  { %v861_v48 = vpop.eup %860 }
 0x3e5   :  { %v472_v49 = vadd.f32 1.0, %v861_v48 }
 0x3e7   :  { %864 = vrcp.f32 %v472_v49 }
 0x3f0   :  { %v863_v53 = vpop.eup %862 }
 0x3f1   :  { %v487_v54 = vmul.f32 %v863_v53, %v485_v13  ;;  %v501_v3 = vsub.f32 1.0, %v863_v53 }
 0x3f3   :  { %491 = vrot.lane.b32.xlu1 %v487_v54, %s922_s11 }
 0x3f4   :  { %v865_v56 = vpop.eup %864 }
 0x3f5   :  { %v488_v57 = vmul.f32 %v865_v56, %v485_v13  ;;  %v502_v6 = vsub.f32 1.0, %v865_v56 }
 0x3f7   :  { %493 = vrot.lane.b32.xlu0 %v488_v57, %s922_s11 }
 0x465   :  { %v492_v62 = vpop.permute.xlu1 %491 }
 0x466   :  { %v497_v63 = vadd.f32 %v492_v62, %v459_v60 }
 0x468   :  { %866 = vtanh.f32 %v497_v63 }
 0x469   :  { %v494_v1 = vpop.permute.xlu0 %493 }
 0x46a   :  { %v498_v2 = vadd.f32 %v494_v1, %v463_v0 }
 0x46c   :  { %868 = vtanh.f32 %v498_v2 }
 0x475   :  { %v867_v4 = vpop.eup %866 }
 0x476   :  { %v503_v5 = vmul.f32 %v867_v4, %v501_v3 }
 0x478   :  { %680 = vst.msk [vmem:[%s1047_s7] sm:$0xff] %vm679_vm2, %v503_v5 }
 0x479   :  { %v869_v7 = vpop.eup %868 }
 0x47a   :  { %v504_v41 = vmul.f32 %v869_v7, %v502_v6 }
 0x47c   :  { %v505_v8 = vpack.c.bf16 %v504_v41, %v503_v5  ;;  %681 = vst.msk [vmem:[%s1047_s7 + $0x8] sm:$0xff] %vm679_vm2, %v504_v41 }
 0x47e   :  { %765 = vmatmul.mubr.msk.bf16.vlgmr.msra.gmra.mxu1 %vm121_vm0, %v505_v8 }
 0x53e   :  { %v582_v15 = vpop.f32.mrf.mxu1 }
 0x53f   :  { %v583_v16 = vadd.f32 %v733_v14, %v582_v15 }
 0x540   :  { %v766_v17 = vpop.f32.mrf.mxu1 }
 0x541   :  { %870 = vtanh.f32 %v583_v16 }
 0x542   :  { %v585_v18 = vpop.f32.mrf.mxu1 }
 0x543   :  { %v586_v19 = vadd.f32 %v733_v14, %v585_v18 }
 0x544   :  { %v767_v20 = vpop.f32.mrf.mxu1 }
 0x545   :  { %872 = vtanh.f32 %v586_v19 }
 0x54e   :  { %v871_v21 = vpop.eup %870 }
 0x552   :  { %v873_v22 = vpop.eup %872 }
 0x553   :  { %v591_v23 = vpack.c.bf16 %v873_v22, %v871_v21 }
 0x555   :  { %777 = vmatmul.mubr.msk.bf16.vlgmr.msra.gmra.mxu0 %vm121_vm0, %v591_v23 }
 0x615   :  { %v670_v25 = vpop.f32.mrf.mxu0 }
 0x616   :  { %v671_v26 = vadd.f32 %v740_v24, %v670_v25 }
 0x617   :  { %v778_v27 = vpop.f32.mrf.mxu0 }
 0x618   :  { %677 = vst.msk [vmem:[%s1046_s6] sm:$0xff] %vm121_vm0, %v671_v26 }
 0x619   :  { %v673_v28 = vpop.f32.mrf.mxu0 }
 0x61a   :  { %v674_v29 = vadd.f32 %v740_v24, %v673_v28 }
 0x61b   :  { %v779_v30 = vpop.f32.mrf.mxu0 }
 0x61c   :  { %678 = vst.msk [vmem:[%s1046_s6 + $0x8] sm:$0xff] %vm121_vm0, %v674_v29 }
 0x61d   :  { %690 = vsyncpa [#allocation3], 1 }
 0x61e   :  { %691 = vsyncpa [#allocation5], 1 }

</bundles_post_ra>
